<compile_context>
chip_gen: v7x
topology: tpu7x:2x2x1
jax: 0.10.0
libtpu: 0.0.40
codegen_flags: <defaults>
</compile_context>

<pallas_src>
import functools

import jax
import jax.numpy as jnp
from jax.experimental import pallas as pl
from jax.experimental.pallas import tpu as pltpu

_BN_EPS = 1e-5
_LANES = 128
_SUBLANES = 8


def _decoder_fused_kernel(*refs, layout, conditional, latent_size):
    """Fused (Linear -> BatchNorm1d(train) -> activation) x n_layers.

    refs: (z_ref, c_ref?, slab_ref, o_ref).
    `layout` is a static tuple of (w_row, gb_row, in_size, out_size) per layer,
    describing where each layer's pre-transposed weight [in, out] and its
    gamma/beta rows live inside the packed parameter slab.
    """
    if conditional:
        z_ref, c_ref, slab_ref, o_ref = refs
    else:
        z_ref, slab_ref, o_ref = refs
        c_ref = None

    n_layers = len(layout)
    h = None
    for i, (w_row, gb_row, in_size, out_size) in enumerate(layout):
        gamma = slab_ref[pl.ds(gb_row, 1), pl.ds(0, out_size)]        # [1, out]
        beta = slab_ref[pl.ds(gb_row + 1, 1), pl.ds(0, out_size)]     # [1, out]

        # ---- Linear (bias elided: cancelled exactly by BN mean subtraction).
        if i == 0:
            if conditional:
                cond_size = in_size - latent_size
                w_z = slab_ref[pl.ds(w_row, latent_size), pl.ds(0, out_size)]
                w_c = slab_ref[pl.ds(w_row + latent_size, cond_size),
                               pl.ds(0, out_size)]
                h = (jnp.dot(z_ref[...], w_z, preferred_element_type=jnp.float32)
                     + jnp.dot(c_ref[...], w_c, preferred_element_type=jnp.float32))
            else:
                w_t = slab_ref[pl.ds(w_row, in_size), pl.ds(0, out_size)]
                h = jnp.dot(z_ref[...], w_t, preferred_element_type=jnp.float32)
        else:
            w_t = slab_ref[pl.ds(w_row, in_size), pl.ds(0, out_size)]
            h = jnp.dot(h, w_t, preferred_element_type=jnp.float32)   # [B, out]

        # ---- BatchNorm1d, training-mode batch stats, one pass, scale/shift form.
        mean = jnp.mean(h, axis=0, keepdims=True)                      # [1, out]
        msq = jnp.mean(h * h, axis=0, keepdims=True)                   # [1, out]
        var = msq - mean * mean                                        # biased var
        inv = jax.lax.rsqrt(var + _BN_EPS)                             # EUP
        scale = gamma * inv
        shift = beta - mean * scale
        h = h * scale + shift

        # ---- Activation: ReLU for hidden layers, Tanh for the last layer.
        if i + 1 < n_layers:
            h = jnp.maximum(h, 0.0)
        else:
            h = jnp.tanh(h)

    o_ref[...] = h.astype(o_ref.dtype)


def pack_decoder_params(params):
    """ONE-TIME layout plumbing: pack all layers into a single padded f32 slab.

    Per layer the slab holds (row-wise): W^T [in, out], gamma [1, out],
    beta [1, out]; each layer block is padded to a multiple of 8 rows and the
    slab width is padded to a multiple of 128 lanes.  Returns (slab, layout)
    where layout is a static tuple of (w_row, gb_row, in_size, out_size).
    """
    max_out = max(w.shape[0] for (w, _b, _g, _bt) in params)
    col_width = max(_LANES, ((max_out + _LANES - 1) // _LANES) * _LANES)

    blocks = []
    layout = []
    row_off = 0
    for (w, _b, gamma, beta) in params:
        out_size, in_size = w.shape
        w_t = jnp.asarray(w, jnp.float32).T                     # [in, out]
        g = jnp.asarray(gamma, jnp.float32).reshape(1, -1)      # [1, out]
        bt = jnp.asarray(beta, jnp.float32).reshape(1, -1)      # [1, out]
        blk = jnp.concatenate([w_t, g, bt], axis=0)             # [in+2, out]
        pad_rows = (-blk.shape[0]) % _SUBLANES
        blk = jnp.pad(blk, ((0, pad_rows), (0, col_width - out_size)))
        blocks.append(blk)
        layout.append((row_off, row_off + in_size, in_size, out_size))
        row_off += blk.shape[0]

    slab = jnp.concatenate(blocks, axis=0)                      # [R, col_width]
    return slab, tuple(layout)


def decoder_forward(slab, layout, z, c, conditional, latent_size):
    """Full decoder MLP as a single fused Pallas kernel (one param DMA)."""
    batch = z.shape[0]
    # PyTorch BatchNorm1d raises on batch size 1 in training mode; guard here
    # rather than silently normalizing with var=0.
    assert batch > 1, "training-mode BatchNorm1d requires batch > 1"

    out_features = layout[-1][3]
    z = z.astype(jnp.float32)
    inputs = [z]
    if conditional:
        inputs.append(c.astype(jnp.float32))
    inputs.append(slab)

    vmem_spec = pl.BlockSpec(memory_space=pltpu.MemorySpace.VMEM)
    kernel = functools.partial(
        _decoder_fused_kernel,
        layout=layout,
        conditional=conditional,
        latent_size=latent_size,
    )

    # Advisory cost estimate (helps XLA schedule around the custom call).
    flops = 0
    transcendentals = 0
    for (_wr, _gr, in_size, out_size) in layout:
        flops += 2 * batch * in_size * out_size       # matmul
        flops += 10 * batch * out_size                # BN + activation (rough)
        transcendentals += out_size                   # rsqrt per feature
    transcendentals += batch * out_features           # final tanh
    bytes_accessed = 4 * (sum(int(a.size) for a in inputs) + batch * out_features)

    return pl.pallas_call(
        kernel,
        out_shape=jax.ShapeDtypeStruct((batch, out_features), jnp.float32),
        in_specs=[vmem_spec] * len(inputs),
        out_specs=vmem_spec,
        compiler_params=pltpu.CompilerParams(
            # Explicit VMEM budget: tiny today, but makes the whole-resident
            # design's limit visible on v7x (64 MiB physical / 32 MiB scoped)
            # and v5e (16 MiB scoped default) if the model is ever widened.
            vmem_limit_bytes=32 * 1024 * 1024,
        ),
        cost_estimate=pl.CostEstimate(
            flops=flops,
            transcendentals=transcendentals,
            bytes_accessed=bytes_accessed,
        ),
    )(*inputs)


def init_decoder_params(key, layer_sizes, latent_size, conditional, conditional_size):
    """Deterministic, PyTorch-default-style init (uniform +-1/sqrt(fan_in)).

    The Linear bias `b` is kept for module fidelity but is NOT used by the
    kernel: training-mode BatchNorm subtracts the batch mean, which cancels a
    per-feature additive bias exactly (variance is unaffected).
    """
    input_size = latent_size + conditional_size if conditional else latent_size
    params = []
    in_sizes = [input_size] + list(layer_sizes[:-1])
    for in_size, out_size in zip(in_sizes, layer_sizes):
        key, kw, kb = jax.random.split(key, 3)
        bound = 1.0 / jnp.sqrt(jnp.float32(in_size))
        w = jax.random.uniform(kw, (out_size, in_size), jnp.float32, -bound, bound)
        b = jax.random.uniform(kb, (out_size,), jnp.float32, -bound, bound)
        gamma = jnp.ones((out_size,), jnp.float32)    # BatchNorm1d weight
        beta = jnp.zeros((out_size,), jnp.float32)    # BatchNorm1d bias
        params.append((w, b, gamma, beta))
    return params


if __name__ == "__main__":
    key = jax.random.PRNGKey(0)

    # Small, module-consistent shapes.
    batch = 8
    latent_size = 8
    conditional_size = 8
    layer_sizes = [32, 16]
    conditional = True

    k_params, k_z, k_c = jax.random.split(key, 3)
    params = init_decoder_params(
        k_params, layer_sizes, latent_size, conditional, conditional_size
    )
    # One-time parameter packing (hoisted out of the forward path).
    slab, layout = pack_decoder_params(params)
    slab = jax.block_until_ready(slab)

    z = jax.random.normal(k_z, (batch, latent_size), jnp.float32)
    c = jax.random.normal(k_c, (batch, conditional_size), jnp.float32)

    out = decoder_forward(slab, layout, z, c, conditional, latent_size)
    out = jax.block_until_ready(out)
    assert out.shape == (batch, layer_sizes[-1])
    assert bool(jnp.all(jnp.isfinite(out)))
    # TODO(synk): running_mean/running_var updates of BatchNorm1d (training-mode
    # side effect) are not tracked; the forward output is unaffected.
    print("KERNEL_OK")
</pallas_src>

<mosaic_0001>
module attributes {stable_mosaic.version = 11 : i64} {
  func.func @_decoder_fused_kernel(%arg0: memref<8x8xf32, #tpu.memory_space<vmem>>, %arg1: memref<8x8xf32, #tpu.memory_space<vmem>>, %arg2: memref<64x128xf32, #tpu.memory_space<vmem>>, %arg3: memref<8x16xf32, #tpu.memory_space<vmem>>) attributes {dimension_semantics = [], scalar_prefetch = 0 : i64, scratch_operands = 0 : i64, tpu.core_type = #tpu.core_type<tc>} {
    %c16 = arith.constant 16 : index
    %c0 = arith.constant 0 : index
    %0 = vector.load %arg2[%c16, %c0] : memref<64x128xf32, #tpu.memory_space<vmem>>, vector<1x32xf32>
    %c17 = arith.constant 17 : index
    %c0_0 = arith.constant 0 : index
    %1 = vector.load %arg2[%c17, %c0_0] : memref<64x128xf32, #tpu.memory_space<vmem>>, vector<1x32xf32>
    %c0_1 = arith.constant 0 : index
    %c0_2 = arith.constant 0 : index
    %2 = vector.load %arg2[%c0_1, %c0_2] : memref<64x128xf32, #tpu.memory_space<vmem>>, vector<8x32xf32>
    %c8 = arith.constant 8 : index
    %c0_3 = arith.constant 0 : index
    %3 = vector.load %arg2[%c8, %c0_3] : memref<64x128xf32, #tpu.memory_space<vmem>>, vector<8x32xf32>
    %c0_4 = arith.constant 0 : index
    %c0_5 = arith.constant 0 : index
    %4 = vector.load %arg0[%c0_4, %c0_5] : memref<8x8xf32, #tpu.memory_space<vmem>>, vector<8x8xf32>
    %cst = arith.constant dense<0.000000e+00> : vector<8x32xf32>
    %5 = tpu.matmul %4, %2, %cst {dimension_numbers = #tpu.dot_dimension_numbers<[1], [0], [0], [1], [0, 0, 1, 1], [], []>} : vector<8x8xf32>, vector<8x32xf32>, vector<8x32xf32> -> vector<8x32xf32>
    %c0_6 = arith.constant 0 : index
    %c0_7 = arith.constant 0 : index
    %6 = vector.load %arg1[%c0_6, %c0_7] : memref<8x8xf32, #tpu.memory_space<vmem>>, vector<8x8xf32>
    %cst_8 = arith.constant dense<0.000000e+00> : vector<8x32xf32>
    %7 = tpu.matmul %6, %3, %cst_8 {dimension_numbers = #tpu.dot_dimension_numbers<[1], [0], [0], [1], [0, 0, 1, 1], [], []>} : vector<8x8xf32>, vector<8x32xf32>, vector<8x32xf32> -> vector<8x32xf32>
    %8 = arith.addf %5, %7 : vector<8x32xf32>
    %cst_9 = arith.constant dense<0.000000e+00> : vector<32xf32>
    %9 = vector.multi_reduction <add>, %8, %cst_9 [0] : vector<8x32xf32> to vector<32xf32>
    %10 = vector.shape_cast %9 : vector<32xf32> to vector<1x32xf32>
    %cst_10 = arith.constant 8.000000e+00 : f32
    %11 = vector.broadcast %cst_10 : f32 to vector<1x32xf32>
    %12 = arith.divf %10, %11 : vector<1x32xf32>
    %13 = arith.mulf %8, %8 : vector<8x32xf32>
    %cst_11 = arith.constant dense<0.000000e+00> : vector<32xf32>
    %14 = vector.multi_reduction <add>, %13, %cst_11 [0] : vector<8x32xf32> to vector<32xf32>
    %15 = vector.shape_cast %14 : vector<32xf32> to vector<1x32xf32>
    %cst_12 = arith.constant 8.000000e+00 : f32
    %16 = vector.broadcast %cst_12 : f32 to vector<1x32xf32>
    %17 = arith.divf %15, %16 : vector<1x32xf32>
    %18 = arith.mulf %12, %12 : vector<1x32xf32>
    %19 = arith.subf %17, %18 : vector<1x32xf32>
    %cst_13 = arith.constant 9.99999974E-6 : f32
    %20 = vector.broadcast %cst_13 : f32 to vector<1x32xf32>
    %21 = arith.addf %19, %20 : vector<1x32xf32>
    %22 = math.rsqrt %21 : vector<1x32xf32>
    %23 = arith.mulf %0, %22 : vector<1x32xf32>
    %24 = arith.mulf %12, %23 : vector<1x32xf32>
    %25 = arith.subf %1, %24 : vector<1x32xf32>
    %26 = vector.broadcast %23 : vector<1x32xf32> to vector<8x32xf32>
    %27 = arith.mulf %8, %26 : vector<8x32xf32>
    %28 = vector.broadcast %25 : vector<1x32xf32> to vector<8x32xf32>
    %29 = arith.addf %27, %28 : vector<8x32xf32>
    %cst_14 = arith.constant 0.000000e+00 : f32
    %30 = vector.broadcast %cst_14 : f32 to vector<8x32xf32>
    %31 = arith.maximumf %29, %30 : vector<8x32xf32>
    %c56 = arith.constant 56 : index
    %c0_15 = arith.constant 0 : index
    %32 = vector.load %arg2[%c56, %c0_15] : memref<64x128xf32, #tpu.memory_space<vmem>>, vector<1x16xf32>
    %c57 = arith.constant 57 : index
    %c0_16 = arith.constant 0 : index
    %33 = vector.load %arg2[%c57, %c0_16] : memref<64x128xf32, #tpu.memory_space<vmem>>, vector<1x16xf32>
    %c24 = arith.constant 24 : index
    %c0_17 = arith.constant 0 : index
    %34 = vector.load %arg2[%c24, %c0_17] : memref<64x128xf32, #tpu.memory_space<vmem>>, vector<32x16xf32>
    %cst_18 = arith.constant dense<0.000000e+00> : vector<8x16xf32>
    %35 = tpu.matmul %31, %34, %cst_18 {dimension_numbers = #tpu.dot_dimension_numbers<[1], [0], [0], [1], [0, 0, 1, 1], [], []>} : vector<8x32xf32>, vector<32x16xf32>, vector<8x16xf32> -> vector<8x16xf32>
    %cst_19 = arith.constant dense<0.000000e+00> : vector<16xf32>
    %36 = vector.multi_reduction <add>, %35, %cst_19 [0] : vector<8x16xf32> to vector<16xf32>
    %37 = vector.shape_cast %36 : vector<16xf32> to vector<1x16xf32>
    %cst_20 = arith.constant 8.000000e+00 : f32
    %38 = vector.broadcast %cst_20 : f32 to vector<1x16xf32>
    %39 = arith.divf %37, %38 : vector<1x16xf32>
    %40 = arith.mulf %35, %35 : vector<8x16xf32>
    %cst_21 = arith.constant dense<0.000000e+00> : vector<16xf32>
    %41 = vector.multi_reduction <add>, %40, %cst_21 [0] : vector<8x16xf32> to vector<16xf32>
    %42 = vector.shape_cast %41 : vector<16xf32> to vector<1x16xf32>
    %cst_22 = arith.constant 8.000000e+00 : f32
    %43 = vector.broadcast %cst_22 : f32 to vector<1x16xf32>
    %44 = arith.divf %42, %43 : vector<1x16xf32>
    %45 = arith.mulf %39, %39 : vector<1x16xf32>
    %46 = arith.subf %44, %45 : vector<1x16xf32>
    %cst_23 = arith.constant 9.99999974E-6 : f32
    %47 = vector.broadcast %cst_23 : f32 to vector<1x16xf32>
    %48 = arith.addf %46, %47 : vector<1x16xf32>
    %49 = math.rsqrt %48 : vector<1x16xf32>
    %50 = arith.mulf %32, %49 : vector<1x16xf32>
    %51 = arith.mulf %39, %50 : vector<1x16xf32>
    %52 = arith.subf %33, %51 : vector<1x16xf32>
    %53 = vector.broadcast %50 : vector<1x16xf32> to vector<8x16xf32>
    %54 = arith.mulf %35, %53 : vector<8x16xf32>
    %55 = vector.broadcast %52 : vector<1x16xf32> to vector<8x16xf32>
    %56 = arith.addf %54, %55 : vector<8x16xf32>
    %57 = math.tanh %56 : vector<8x16xf32>
    %c0_24 = arith.constant 0 : index
    %c0_25 = arith.constant 0 : index
    %58 = vector.load %arg3[%c0_24, %c0_25] : memref<8x16xf32, #tpu.memory_space<vmem>>, vector<8x16xf32>
    tpu.vector_store %arg3[%c0_24, %c0_25], %57 {strides = array<i32>} : memref<8x16xf32, #tpu.memory_space<vmem>>, vector<8x16xf32>,
    return
  }
}

</mosaic_0001>

<bundles_post_ra>
// kernel: tpu_custom_call.1
= control target key start
LH: loop header
LB: loop body
LE: loop exit
PB: predicated region body
PF: predicated region fallthrough
CT: control target
= control target key end

     0   :  { %8 = vsyncpa [#allocation3], 0  ;;  %s607_s0 = inlined_call_operand.hbm [shape: f32[8,8], index: 0, kind: input, shape index: {}]   ;;  %s608_s1 = inlined_call_operand.hbm [shape: f32[8,8], index: 1, kind: input, shape index: {}]   ;;  %s609_s2 = inlined_call_operand.hbm [shape: f32[64,128], index: 2, kind: input, shape index: {}]   ;;  %s610_s3 = inlined_call_operand.hbm [shape: f32[8,16], index: 3, kind: output, shape index: {}]  }
   0x1   :  { %9 = vsyncpa [#allocation6], 0 }
   0x2   :  { %10 = vsyncpa [#allocation4], 0  ;;  %s524_s12 = smov [#allocation5]   ;;  %s525_s14 = smov [#allocation2]  }
   0x3   :  { %s27_s13 = sshll.u32 %s524_s12, 4  ;;  %s17_s15 = sshll.u32 %s525_s14, 4  ;;  %s28_s13 = int_to_ptr.vmem [resolvable:$true] %s27_s13  ;;  %s18_s15 = int_to_ptr.vmem [resolvable:$true] %s17_s15 }
   0x4   :  { %s430_s18 = scalar_lea.hbm %s608_s1, 128 }
   0x5   :  { %p431_p0 = scmp.ne.s32.totalorder %s608_s1, %s430_s18  ;;  %p434_p1 = scmp.lt.u32.totalorder %s430_s18, %s608_s1 }
   0x7   :  { %p436_p2 = pnand %p434_p1, %p431_p0 }
   0x9   :  { %439 = shalt.err (!%p436_p2)
}
   0xa   :  { %s440_s23 = scalar_lea.vmem %s28_s13, 128  ;;  %p445_p4 = scmp.lt.s32.totalorder %s28_s13, %s28_s13 }
   0xb   :  { %p441_p3 = scmp.ne.s32.totalorder %s28_s13, %s440_s23  ;;  %p446_p5 = scmp.lt.s32.totalorder %s440_s23, %s440_s23 }
   0xd   :  { %p447_p6 = por %p446_p5, %p445_p4 }
   0xf   :  { %p448_p7 = pnand %p447_p6, %p441_p3 }
  0x11   :  { %451 = shalt.err (!%p448_p7)
}
  0x12   :  { %30 = dma.hbm_to_vmem [thread:$0]  %s608_s1, 128, %s28_s13, [#allocation6]  }
  0x13   :  { %s452_s28 = scalar_lea.hbm %s607_s0, 128 }
  0x14   :  { %p453_p8 = scmp.ne.s32.totalorder %s607_s0, %s452_s28  ;;  %p456_p9 = scmp.lt.u32.totalorder %s452_s28, %s607_s0 }
  0x16   :  { %p458_p10 = pnand %p456_p9, %p453_p8 }
  0x18   :  { %461 = shalt.err (!%p458_p10)
}
  0x19   :  { %s462_s6 = scalar_lea.vmem %s18_s15, 128  ;;  %p467_p12 = scmp.lt.s32.totalorder %s18_s15, %s18_s15 }
  0x1a   :  { %p463_p11 = scmp.ne.s32.totalorder %s18_s15, %s462_s6  ;;  %p468_p13 = scmp.lt.s32.totalorder %s462_s6, %s462_s6 }
  0x1c   :  { %p469_p0 = por %p468_p13, %p467_p12 }
  0x1e   :  { %p470_p1 = pnand %p469_p0, %p463_p11 }
  0x20   :  { %473 = shalt.err (!%p470_p1)
}
  0x21   :  { %20 = dma.hbm_to_vmem [thread:$0]  %s607_s0, 128, %s18_s15, [#allocation3]  }
  0x22   :  { %s526_s8 = smov [#allocation7]   ;;  %s474_s12 = scalar_lea.hbm %s609_s2, 1024 }
  0x23   :  { %s36_s9 = sshll.u32 %s526_s8, 4  ;;  %p475_p2 = scmp.ne.s32.totalorder %s609_s2, %s474_s12  ;;  %s37_s9 = int_to_ptr.vmem [resolvable:$true] %s36_s9 }
  0x24   :  { %p478_p3 = scmp.lt.u32.totalorder %s474_s12, %s609_s2 }
  0x26   :  { %p480_p4 = pnand %p478_p3, %p475_p2 }
  0x28   :  { %483 = shalt.err (!%p480_p4)
}
  0x29   :  { %s484_s18 = scalar_lea.vmem %s37_s9, 1024  ;;  %p489_p6 = scmp.lt.s32.totalorder %s37_s9, %s37_s9 }
  0x2a   :  { %p485_p5 = scmp.ne.s32.totalorder %s37_s9, %s484_s18  ;;  %p490_p7 = scmp.lt.s32.totalorder %s484_s18, %s484_s18 }
  0x2c   :  { %p491_p8 = por %p490_p7, %p489_p6 }
  0x2e   :  { %p492_p9 = pnand %p491_p8, %p485_p5 }
  0x30   :  { %495 = shalt.err (!%p492_p9)
}
  0x31   :  { %s527_s0 = smov 128   ;;  %s528_s15 = smov 8  }
  0x32   :  { %42 = dma.hbm_to_vmem [thread:$0]  %s609_s2, 1024, %s37_s9, [#allocation6], %s527_s0, %s527_s0, %s528_s15  }
  0x33   :  { %518 = dma.done.wait [#allocation3], 128  }
  0x34   :  { %519 = vsyncadd [#allocation3], 4294967168 }
  0x35   :  { %520 = dma.done.wait [#allocation6], 1152  }
  0x36   :  { %521 = vsyncadd [#allocation6], 4294966144  ;;  %v529_v0 = vmov 0.0   ;;  %vm530_vm0 = vmmov 0   ;;  %vm58_vm1 = vcmask 64512   ;;  %v55_v1 = vld [vmem:[#allocation7 + $0x8] sm:$0xff]  ;;  %v231_v34 = vlaneseq }
  0x37   :  { %386 = vmatprep.subr.mxu0 %v529_v0  ;;  %388 = vmatprep.mubr.msk.f32.mxu0 %vm530_vm0, %v529_v0  ;;  %v57_v2 = vld [vmem:[#allocation5] sm:$0xff]  ;;  %v54_v3 = vld [vmem:[#allocation7] sm:$0xff]  ;;  %v56_v4 = vld [vmem:[#allocation2] sm:$0xff]  ;;  %v531_v8 = vmov 0.0|0.0   ;;  %vm205_vm2 = vcmask 261120   ;;  %vm321_vm3 = vcmask 130048  }
  0x38   :  { %404 = vmatprep.mubr.msk.f32.mxu1 %vm530_vm0, %v529_v0  ;;  %387 = vmatpush3.msra.mxu0 %v55_v1  ;;  %v244_v5 = vld [vmem:[#allocation7 + $0x18] sm:$0xff]  ;;  %v245_v6 = vld [vmem:[#allocation7 + $0x20] sm:$0xff]  ;;  %v246_v9 = vld [vmem:[#allocation7 + $0x28] sm:$0xff]  ;;  %v232_v35 = vshrl.u32 %v231_v34, 7  ;;  %s532_s2 = smov [#allocation8]  }
  0x39   :  { %389 = vmatmul.mubr.msk.f32.vlgmr.msra.gmra.mrb[0].mxu0 %vm58_vm1, %v57_v2  ;;  %391 = vmatprep.subr.mxu0 %v529_v0  ;;  %v408_v7 = vpack.c.bf16 %v245_v6, %v244_v5  ;;  %v247_v10 = vld [vmem:[#allocation7 + $0x30] sm:$0xff]  ;;  %v242_v6 = vld [vmem:[#allocation7 + $0x38] sm:$0x1]  ;;  %s364_s21 = sshll.u32 %s532_s2, 4  ;;  %s365_s21 = int_to_ptr.vmem [resolvable:$true] %s364_s21 }
  0x3a   :  { %392 = vmatpush3.msra.mxu0 %v54_v3  ;;  %393 = vmatprep.mubr.msk.f32.mxu0 %vm530_vm0, %v529_v0  ;;  %v411_v11 = vpack.c.bf16 %v247_v10, %v246_v9  ;;  %v52_v36 = vld [vmem:[#allocation7 + $0x10] sm:$0x1]  ;;  %v233_v37 = vsub.s32 0, %v232_v35  ;;  %v53_v40 = vld [vmem:[#allocation7 + $0x11] sm:$0x1]  ;;  %s496_s22 = scalar_lea.vmem %s365_s21, 128  ;;  %p501_p11 = scmp.lt.s32.totalorder %s365_s21, %s365_s21 }
  0x3b   :  { %407 = vmatprep.subr.bf16.mxu1 %v531_v8  ;;  %v243_v9 = vld [vmem:[#allocation7 + $0x39] sm:$0x1]  ;;  %p497_p10 = scmp.ne.s32.totalorder %s365_s21, %s496_s22  ;;  %p502_p12 = scmp.lt.s32.totalorder %s496_s22, %s496_s22 }
  0x3c   :  { %409 = vmatpush3.bf16.msra.mxu1 %v408_v7 }
  0x3d   :  { %410 = vmatprep.subr.bf16.mxu1 %v531_v8  ;;  %p503_p13 = por %p502_p12, %p501_p11 }
  0x3f   :  { %p504_p0 = pnand %p503_p13, %p497_p10 }
  0x40   :  { %412 = vmatpush3.bf16.msra.mxu1 %v411_v11 }
  0x41   :  { %394 = vmatmul.mubr.msk.f32.vlgmr.msra.gmra.mrb[0].mxu0 %vm58_vm1, %v56_v4 }
 0x114   :  { %v201_v12 = vpop.f32.mrb[0].mxu0 }
 0x115   :  { %v206_v13 = vsel %vm205_vm2, %v201_v12, 0.0  ;;  %v215_v14 = vmul.f32 %v201_v12, %v201_v12  ;;  %v395_v15 = vpop.f32.mrb[1].mxu0 }
 0x116   :  { %v207_v16 = vrot.slane %v206_v13, 4 }
 0x117   :  { %v216_v17 = vsel %vm205_vm2, %v215_v14, 0.0 }
 0x118   :  { %v208_v18 = vadd.f32 %v207_v16, %v206_v13  ;;  %v217_v19 = vrot.slane %v216_v17, 4 }
 0x11a   :  { %v209_v20 = vrot.slane %v208_v18, 2  ;;  %v218_v21 = vadd.f32 %v217_v19, %v216_v17 }
 0x11c   :  { %v210_v22 = vadd.f32 %v209_v20, %v208_v18  ;;  %v219_v23 = vrot.slane %v218_v21, 2 }
 0x11e   :  { %v211_v24 = vrot.slane %v210_v22, 1  ;;  %v220_v25 = vadd.f32 %v219_v23, %v218_v21 }
 0x120   :  { %v212_v26 = vadd.f32 %v211_v24, %v210_v22  ;;  %v221_v27 = vrot.slane %v220_v25, 1 }
 0x122   :  { %v214_v28 = vmul.f32 0.125, %v212_v26  ;;  %v222_v29 = vadd.f32 %v221_v27, %v220_v25 }
 0x124   :  { %v223_v30 = vmul.f32 0.125, %v222_v29  ;;  %v224_v31 = vmul.f32 %v214_v28, %v214_v28 }
 0x126   :  { %v225_v32 = vsub.f32 %v223_v30, %v224_v31 }
 0x128   :  { %v226_v33 = vadd.f32 1e-05, %v225_v32 }
 0x12a   :  { %424 = vrsqrt.f32 %v226_v33 }
 0x134   :  { %v425_v38 = vpop.eup %424 }
 0x135   :  { %v228_v39 = vmul.f32 %v425_v38, %v52_v36 }
 0x137   :  { %v229_v41 = vmul.f32 %v228_v39, %v214_v28  ;;  %v234_v42 = vrot.slane %v228_v39, %v233_v37 }
 0x139   :  { %v230_v43 = vsub.f32 %v53_v40, %v229_v41  ;;  %v235_v44 = vmul.f32 %v234_v42, %v201_v12 }
 0x13b   :  { %v239_v45 = vrot.slane %v230_v43, %v233_v37 }
 0x13d   :  { %v240_v46 = vadd.f32 %v239_v45, %v235_v44 }
 0x13f   :  { %v241_v47 = vmax.f32 %v240_v46, 0.0 }
 0x141   :  { %405 = vmatmul.mubr.msk.f32.vlgmr.msra.gmra.mrb[0].mxu1 %vm205_vm2, %v241_v47 }
 0x214   :  { %v317_v48 = vpop.f32.mrb[0].mxu1 }
 0x215   :  { %v322_v49 = vsel %vm321_vm3, %v317_v48, 0.0  ;;  %v330_v50 = vmul.f32 %v317_v48, %v317_v48  ;;  %v406_v51 = vpop.f32.mrb[1].mxu1 }
 0x216   :  { %v323_v52 = vrot.slane %v322_v49, 4 }
 0x217   :  { %v331_v53 = vsel %vm321_vm3, %v330_v50, 0.0 }
 0x218   :  { %v324_v54 = vadd.f32 %v323_v52, %v322_v49  ;;  %v332_v55 = vrot.slane %v331_v53, 4 }
 0x21a   :  { %v325_v56 = vrot.slane %v324_v54, 2  ;;  %v333_v57 = vadd.f32 %v332_v55, %v331_v53 }
 0x21c   :  { %v326_v58 = vadd.f32 %v325_v56, %v324_v54  ;;  %v334_v59 = vrot.slane %v333_v57, 2 }
 0x21e   :  { %v327_v60 = vrot.slane %v326_v58, 1  ;;  %v335_v61 = vadd.f32 %v334_v59, %v333_v57 }
 0x220   :  { %v328_v62 = vadd.f32 %v327_v60, %v326_v58  ;;  %v336_v63 = vrot.slane %v335_v61, 1 }
 0x222   :  { %v329_v0 = vmul.f32 0.125, %v328_v62  ;;  %v337_v1 = vadd.f32 %v336_v63, %v335_v61 }
 0x224   :  { %v338_v2 = vmul.f32 0.125, %v337_v1  ;;  %v339_v3 = vmul.f32 %v329_v0, %v329_v0 }
 0x226   :  { %v340_v4 = vsub.f32 %v338_v2, %v339_v3 }
 0x228   :  { %v341_v5 = vadd.f32 1e-05, %v340_v4 }
 0x22a   :  { %426 = vrsqrt.f32 %v341_v5 }
 0x234   :  { %v427_v7 = vpop.eup %426 }
 0x235   :  { %v343_v8 = vmul.f32 %v427_v7, %v242_v6 }
 0x237   :  { %v344_v10 = vmul.f32 %v343_v8, %v329_v0  ;;  %v349_v11 = vrot.slane %v343_v8, %v233_v37 }
 0x239   :  { %v345_v12 = vsub.f32 %v243_v9, %v344_v10  ;;  %v350_v13 = vmul.f32 %v349_v11, %v317_v48 }
 0x23b   :  { %v354_v14 = vrot.slane %v345_v12, %v233_v37 }
 0x23d   :  { %v355_v15 = vadd.f32 %v354_v14, %v350_v13 }
 0x23f   :  { %428 = vtanh.f32 %v355_v15 }
 0x249   :  { %v429_v16 = vpop.eup %428 }
 0x24a   :  { %357 = vst.msk [vmem:[#allocation8] sm:$0xff] %vm321_vm3, %v429_v16 }
 0x24b   :  { %507 = shalt.err (!%p504_p0)
}
 0x24c   :  { %s508_s25 = scalar_lea.hbm %s610_s3, 128 }
 0x24d   :  { %p509_p1 = scmp.ne.s32.totalorder %s610_s3, %s508_s25  ;;  %p512_p2 = scmp.lt.u32.totalorder %s508_s25, %s610_s3 }
 0x24f   :  { %p514_p3 = pnand %p512_p2, %p509_p1 }
 0x251   :  { %517 = shalt.err (!%p514_p3)
}
 0x252   :  { %367 = dma.vmem_to_hbm [thread:$0]  %s365_s21, 128, %s610_s3, [#allocation4]  }
 0x253   :  { %522 = dma.done.wait [#allocation4], 128  }
 0x254   :  { %523 = vsyncadd [#allocation4], 4294967168 }
 0x255   :  { %371 = vsyncpa [#allocation3], 1 }
 0x256   :  { %372 = vsyncpa [#allocation6], 1 }
 0x257   :  { %373 = vsyncpa [#allocation4], 1 }

</bundles_post_ra>
